<compile_context>
chip_gen: v7x
topology: tpu7x:2x2x1
jax: 0.10.0
libtpu: 0.0.40
codegen_flags: <defaults>
</compile_context>

<pallas_src>
import jax
import jax.numpy as jnp
from jax.experimental import pallas as pl
from jax.experimental.pallas import tpu as pltpu

_C_PAD = 128  # lane-dense padded class dimension


def nsp_kernel(x_ref, w_ref, b_ref, o_ref):
    # x_ref : (tb, H)       CLS activations (native dtype)
    # w_ref : (H, 128)      zero-padded linear weight (original dtype)
    # b_ref : (1, 128)      zero-padded linear bias, f32
    # o_ref : (tb, 128)     log-probabilities in lanes 0-1, f32
    logits = jnp.dot(x_ref[...], w_ref[...],
                     preferred_element_type=jnp.float32) + b_ref[...]

    # Closed-form, numerically stable 2-class log-softmax (no XLU reduce).
    l0 = logits[:, 0:1]
    l1 = logits[:, 1:2]
    m = jnp.maximum(l0, l1)                                   # (tb, 1)
    lse = m + jnp.log(jnp.exp(l0 - m) + jnp.exp(l1 - m))      # (tb, 1)
    # Full-vreg lane-dense store; padded lanes hold -lse and are sliced off
    # in the wrapper.
    o_ref[...] = logits - lse


def _vmem_budget():
    """(vmem_limit_bytes, activation-double-buffer budget) per chip gen."""
    try:
        phys = pltpu.get_tpu_info().vmem_capacity_bytes
    except Exception:
        phys = 64 * 1024 * 1024  # conservative (v7x physical)
    limit = min((phys * 3) // 4, 96 * 1024 * 1024)   # 96 MiB v5e/v6e, 48 MiB v7x
    x_budget = limit // 2                            # headroom for w/b/out/scratch
    return limit, x_budget


def next_sentence_prediction(x, weight, bias, *, block_b=None):
    """x: [B, S, H]; weight: [2, H]; bias: [2] -> log-probs [B, 2] (f32)."""
    B, S, H = x.shape
    C = weight.shape[0]

    vmem_limit, x_budget = _vmem_budget()

    # Keep the classifier weight in its original dtype (no downcast vs. the
    # PyTorch reference); pad classes to 128 lanes with zeros.
    w_t = weight.T                                   # (H, C)
    w_pad = jnp.zeros((H, _C_PAD), dtype=w_t.dtype).at[:, :C].set(w_t)
    b_pad = jnp.zeros((1, _C_PAD), dtype=jnp.float32).at[:, :C].set(
        bias.astype(jnp.float32).reshape(1, C))

    # Fused CLS selection: view x as (B, S*H); the (tb, H) block at column
    # block 0 is exactly the CLS token of each row.  The lane (last) block dim
    # must be a multiple of 128 (true for real BERT hidden sizes) or span the
    # whole last dim; otherwise fall back to a wrapper slice.
    if H % 128 == 0 or S == 1:
        x_in = x.reshape(B, S * H)
    else:
        x_in = x[:, 0, :]                            # fallback glue slice (B, H)

    # Batch tile: large enough to amortize per-step grid overhead (~0.35us +
    # MXU fill/drain), small enough that the double-buffered activation tile
    # pair fits the per-generation VMEM budget, and small enough that the
    # grid has >= 2 steps so the v7x megacore can shard the batch axis.
    if block_b is None:
        row_bytes = H * x.dtype.itemsize
        cap = max(8, (x_budget // (2 * row_bytes)) // 8 * 8)
        cap = min(cap, 4096)
        if B <= 8:
            block_b = B
        else:
            half = -(-B // 2)                        # ceil(B/2)
            half = -(-half // 8) * 8                 # round up to multiple of 8
            block_b = max(8, min(cap, half))

    grid = (pl.cdiv(B, block_b),)

    out_padded = pl.pallas_call(
        nsp_kernel,
        out_shape=jax.ShapeDtypeStruct((B, _C_PAD), jnp.float32),
        grid=grid,
        in_specs=[
            pl.BlockSpec((block_b, H), lambda i: (i, 0)),    # CLS acts (pipelined)
            pl.BlockSpec((H, _C_PAD), lambda i: (0, 0)),     # weight, VMEM-resident
            pl.BlockSpec((1, _C_PAD), lambda i: (0, 0)),     # bias, VMEM-resident
        ],
        out_specs=pl.BlockSpec((block_b, _C_PAD), lambda i: (i, 0)),
        compiler_params=pltpu.CompilerParams(
            dimension_semantics=("parallel",),
            vmem_limit_bytes=vmem_limit),
        cost_estimate=pl.CostEstimate(
            flops=2 * B * H * _C_PAD,
            transcendentals=3 * B,
            bytes_accessed=B * H * x.dtype.itemsize
            + H * _C_PAD * w_pad.dtype.itemsize
            + B * _C_PAD * 4,
        ),
    )(x_in, w_pad, b_pad)

    return out_padded[:, :C]


if __name__ == "__main__":
    # Main check: BERT-like small shapes exercising the fused CLS path, a
    # multi-step batch grid (B=16 -> block_b=8 -> 2 grid steps for megacore),
    # and the lane-dense padded output.
    B, S, H, C = 16, 8, 128, 2

    key = jax.random.PRNGKey(0)
    kx, kw, kb = jax.random.split(key, 3)

    x = jax.random.normal(kx, (B, S, H), dtype=jnp.float32)
    bound = 1.0 / (H ** 0.5)
    weight = jax.random.uniform(kw, (C, H), minval=-bound, maxval=bound,
                                dtype=jnp.float32)
    bias = jax.random.uniform(kb, (C,), minval=-bound, maxval=bound,
                              dtype=jnp.float32)

    out = next_sentence_prediction(x, weight, bias)
    out = jax.block_until_ready(out)

    ref = jax.nn.log_softmax(x[:, 0] @ weight.T + bias, axis=-1)
    assert out.shape == (B, C)
    assert jnp.allclose(out, ref, atol=1e-5, rtol=1e-5)

    # Secondary check: fallback path for a hidden size that is not a multiple
    # of 128 (matches the original tiny-shape example) with a 1-step grid.
    B2, S2, H2 = 2, 8, 32
    k2x, k2w, k2b = jax.random.split(jax.random.PRNGKey(1), 3)
    x2 = jax.random.normal(k2x, (B2, S2, H2), dtype=jnp.float32)
    bound2 = 1.0 / (H2 ** 0.5)
    w2 = jax.random.uniform(k2w, (C, H2), minval=-bound2, maxval=bound2,
                            dtype=jnp.float32)
    b2 = jax.random.uniform(k2b, (C,), minval=-bound2, maxval=bound2,
                            dtype=jnp.float32)
    out2 = jax.block_until_ready(next_sentence_prediction(x2, w2, b2))
    ref2 = jax.nn.log_softmax(x2[:, 0] @ w2.T + b2, axis=-1)
    assert out2.shape == (B2, C)
    assert jnp.allclose(out2, ref2, atol=1e-5, rtol=1e-5)

    print("KERNEL_OK")
</pallas_src>

<mosaic_0001>
module attributes {stable_mosaic.version = 11 : i64} {
  func.func @nsp_kernel(%arg0: i32, %arg1: memref<8x128xf32, #tpu.memory_space<vmem>>, %arg2: memref<128x128xf32, #tpu.memory_space<vmem>>, %arg3: memref<1x128xf32, #tpu.memory_space<vmem>>, %arg4: memref<8x128xf32, #tpu.memory_space<vmem>>) attributes {dimension_semantics = [#tpu.dimension_semantics<parallel>], iteration_bounds = array<i64: 2>, scalar_prefetch = 0 : i64, scratch_operands = 0 : i64, tpu.core_type = #tpu.core_type<tc>, window_params = [{transform_indices = @transform_0, window_bounds = array<i64: 8, 128>}, {pipeline_mode = #tpu.pipeline_mode<synchronous>, transform_indices = @transform_1, window_bounds = array<i64: 128, 128>}, {pipeline_mode = #tpu.pipeline_mode<synchronous>, transform_indices = @transform_2, window_bounds = array<i64: 1, 128>}, {transform_indices = @transform_3, window_bounds = array<i64: 8, 128>}]} {
    %c0 = arith.constant 0 : index
    %c0_0 = arith.constant 0 : index
    %0 = vector.load %arg1[%c0, %c0_0] : memref<8x128xf32, #tpu.memory_space<vmem>>, vector<8x128xf32>
    %c0_1 = arith.constant 0 : index
    %c0_2 = arith.constant 0 : index
    %1 = vector.load %arg2[%c0_1, %c0_2] : memref<128x128xf32, #tpu.memory_space<vmem>>, vector<128x128xf32>
    %cst = arith.constant dense<0.000000e+00> : vector<8x128xf32>
    %2 = tpu.matmul %0, %1, %cst {dimension_numbers = #tpu.dot_dimension_numbers<[1], [0], [0], [1], [0, 0, 1, 1], [], []>} : vector<8x128xf32>, vector<128x128xf32>, vector<8x128xf32> -> vector<8x128xf32>
    %c0_3 = arith.constant 0 : index
    %c0_4 = arith.constant 0 : index
    %3 = vector.load %arg3[%c0_3, %c0_4] : memref<1x128xf32, #tpu.memory_space<vmem>>, vector<1x128xf32>
    %4 = vector.broadcast %3 : vector<1x128xf32> to vector<8x128xf32>
    %5 = arith.addf %2, %4 : vector<8x128xf32>
    %6 = vector.extract_strided_slice %5 {offsets = [0, 0], sizes = [8, 1], strides = [1, 1]} : vector<8x128xf32> to vector<8x1xf32>
    %7 = vector.extract_strided_slice %5 {offsets = [0, 1], sizes = [8, 1], strides = [1, 1]} : vector<8x128xf32> to vector<8x1xf32>
    %8 = arith.maximumf %6, %7 : vector<8x1xf32>
    %9 = arith.subf %6, %8 : vector<8x1xf32>
    %10 = math.exp %9 : vector<8x1xf32>
    %11 = arith.subf %7, %8 : vector<8x1xf32>
    %12 = math.exp %11 : vector<8x1xf32>
    %13 = arith.addf %10, %12 : vector<8x1xf32>
    %14 = math.log %13 : vector<8x1xf32>
    %15 = arith.addf %8, %14 : vector<8x1xf32>
    %16 = vector.broadcast %15 : vector<8x1xf32> to vector<8x128xf32>
    %17 = arith.subf %5, %16 : vector<8x128xf32>
    %c0_5 = arith.constant 0 : index
    %c0_6 = arith.constant 0 : index
    %18 = vector.load %arg4[%c0_5, %c0_6] : memref<8x128xf32, #tpu.memory_space<vmem>>, vector<8x128xf32>
    tpu.vector_store %arg4[%c0_5, %c0_6], %17 {strides = array<i32>} : memref<8x128xf32, #tpu.memory_space<vmem>>, vector<8x128xf32>,
    return
  }
  func.func @transform_0(%arg0: i32) -> (i32, i32) {
    %c0_i32 = arith.constant 0 : i32
    %c0_i32_0 = arith.constant 0 : i32
    return %arg0, %c0_i32 : i32, i32
  }
  func.func @transform_1(%arg0: i32) -> (i32, i32) {
    %c0_i32 = arith.constant 0 : i32
    %c0_i32_0 = arith.constant 0 : i32
    %c0_i32_1 = arith.constant 0 : i32
    return %c0_i32, %c0_i32_0 : i32, i32
  }
  func.func @transform_2(%arg0: i32) -> (i32, i32) {
    %c0_i32 = arith.constant 0 : i32
    %c0_i32_0 = arith.constant 0 : i32
    %c0_i32_1 = arith.constant 0 : i32
    return %c0_i32, %c0_i32_0 : i32, i32
  }
  func.func @transform_3(%arg0: i32) -> (i32, i32) {
    %c0_i32 = arith.constant 0 : i32
    %c0_i32_0 = arith.constant 0 : i32
    return %arg0, %c0_i32 : i32, i32
  }
}

</mosaic_0001>

<bundles_post_ra>
// kernel: tpu_custom_call.1
= control target key start
LH: loop header
LB: loop body
LE: loop exit
PB: predicated region body
PF: predicated region fallthrough
CT: control target
= control target key end

     0   :  { %8 = vsyncpa [#allocation3], 0  ;;  %s953_s0 = inlined_call_operand.hbm [shape: f32[16,1024], index: 0, kind: input, shape index: {}]   ;;  %s954_s1 = inlined_call_operand.hbm [shape: f32[128,128], index: 1, kind: input, shape index: {}]   ;;  %s955_s2 = inlined_call_operand.vmem [shape: f32[1,128], index: 2, kind: input, shape index: {}]   ;;  %s956_s3 = inlined_call_operand.hbm [shape: f32[16,128], index: 3, kind: output, shape index: {}]  }
   0x1   :  { %10 = vsyncpa [#allocation3 + $0x1], 0 }
   0x2   :  { %11 = vsyncpa [#allocation6], 0 }
   0x3   :  { %12 = vsyncpa [#allocation4], 0 }
   0x4   :  { %14 = vsyncpa [#allocation4 + $0x1], 0  ;;  %s747_s12 = smov 0   ;;  %s749_s13 = smov 0  }
   0x5   :  { %s751_s14 = smov 0   ;;  %s753_s15 = smov 0  }
   0x6 LB: > { %s768_s16 = sadd.s32 4294967295, %s714_s15   ;;  %s420_s17 = sadd.s32 4294967294, %s714_s15   ;;  %s714_s15 = sphi %s753_s15, %s976_s15   ;;  %s710_s14 = sphi %s751_s14, %s975_s14   ;;  %s706_s13 = sphi %s749_s13, %s974_s13   ;;  %s702_s12 = sphi %s747_s12, %s973_s12  }
   0x7   : > { %p40_p0 = scmp.ne.s32.totalorder %s706_s13, %s702_s12  ;;  %p957_p1 = scmp.eq.s32.totalorder %s768_s16, 0 }
   0x8   : > { %p112_p3 = scmp.eq.s32.totalorder %s420_s17, 1  ;;  %p421_p5 = scmp.ge.s32.totalorder %s714_s15, 1 }
   0x9   : > { %p777_p4 = por %p957_p1, %p40_p0  ;;  %p119_p7 = scmp.lt.s32.totalorder %s714_s15, 3 }
   0xa   : > { %p782_p6 = por %p112_p3, %p40_p0  ;;  %s716_s21 = smov [#allocation5]  }
   0xb   : > { %s960_s18 = scalar_select %p777_p4, 1, 0 }
   0xc   : > { %s961_s19 = scalar_select %p782_p6, 1, 0 }
   0xd   : > { %p787_p8 = pnand %p421_p5, %p119_p7  ;;  %s131_s22 = sshll.u32 %s716_s21, 4  ;;  %s791_s22 = int_to_ptr.vmem [resolvable:$true] %s131_s22 }
   0xe   : > { %s803_s24 = sadd.s32 1, %s714_s15   ;;  %s27_s25 = sadd.s32 1, %s710_s14 }
   0xf   : > { %s962_s20 = scalar_select %p787_p8, 1, 0 }
  0x10   : > { %p521_p9 = pneg %p787_p8  ;;  %s24_s26 = ssub.s32 %s714_s15, %s803_s24 }
  0x11   : > { %s586_s29 = scalar_lea.hbm %s954_s1, 2048 }
  0x12   : > { %p798_p11 = pnand %p521_p9, %p957_p1  ;;  %p587_p12 = scmp.ne.s32.totalorder %s954_s1, %s586_s29 }
  0x13   : > { %p593_p5 = scmp.lt.u32.totalorder %s586_s29, %s954_s1 }
  0x14   : > { %p588_p13 = pneg %p798_p11 }
  0x16   : > { %p589_p0 = pnand %p588_p13, %p587_p12 }
  0x18   : > { %p590_p3 = pneg %p589_p0 }
  0x1a   : > { %p595_p7 = pnand %p593_p5, %p590_p3 }
  0x1c   : > { %598 = shalt.err (!%p595_p7)
}
  0x1d   : > { %s599_s7 = scalar_lea.vmem %s791_s22, 2048  ;;  %p607_p2 = scmp.lt.s32.totalorder %s791_s22, %s791_s22 }
  0x1e   : > { %p600_p9 = scmp.ne.s32.totalorder %s791_s22, %s599_s7  ;;  %p608_p6 = scmp.lt.s32.totalorder %s599_s7, %s599_s7 }
  0x20   : > { %p602_p10 = pnand %p600_p9, %p588_p13  ;;  %p609_p4 = por %p608_p6, %p607_p2 }
  0x22   : > { %p603_p1 = pneg %p602_p10 }
  0x24   : > { %p610_p8 = pnand %p609_p4, %p603_p1 }
  0x26   : > { %613 = shalt.err (!%p610_p8)
}
  0x27   : > { %s717_s8 = smov 128   ;;  %s718_s9 = smov 8  }
  0x28   : > { %524 = dma.hbm_to_vmem [thread:$0]  (!%p798_p11), %s954_s1, 2048, %s791_s22, [#allocation6], %s717_s8, %s717_s8, %s718_s9  }
  0x29   : > { %p25_p2 = scmp.eq.s32.totalorder %s24_s26, 0  ;;  %p34_p1 = scmp.ne.s32.totalorder %s710_s14, %s706_s13 }
  0x2a   : > { %p35_p4 = scmp.eq.s32.totalorder %s714_s15, 0  ;;  %p534_p6 = scmp.lt.s32.totalorder %s714_s15, 2 }
  0x2b   : > { %s834_s17 = scalar_select %p25_p2, %s710_s14, %s27_s25  }
  0x2c   : > { %p36_p8 = por %p35_p4, %p34_p1  ;;  %p964_p10 = scmp.eq.s32.totalorder %s768_s16, 1 }
  0x2d   : > { %s148_s27 = sand.u32 1, %s710_s14   ;;  %s436_s28 = sshll.u32 %s714_s15, 10 }
  0x2e   : > { %p838_p12 = por %p964_p10, %p34_p1  ;;  %s424_s29 = sshll.u32 %s148_s27, 3 }
  0x2f   : > { %s847_s4 = scalar_lea.hbm %s953_s0, %s436_s28  ;;  %s152_s22 = scalar_lea.vmem [#allocation2], %s424_s29 }
  0x30   : > { %s160_s25 = sshll.u32 %s152_s22, 4  ;;  %p849_p11 = pnand %p534_p6, %p36_p8  ;;  %s853_s25 = int_to_ptr.vmem [resolvable:$true] %s160_s25 }
  0x31   : > { %s149_s5 = scalar_lea.sflag [#allocation3], %s148_s27  ;;  %s614_s6 = scalar_lea.hbm %s847_s4, 128 }
  0x32   : > { %p615_p13 = scmp.ne.s32.totalorder %s847_s4, %s614_s6  ;;  %p616_p0 = pneg %p849_p11 }
  0x33   : > { %s619_s9 = scalar_lea.hbm %s953_s0, 2048  ;;  %p620_p7 = scmp.lt.u32.totalorder %s847_s4, %s953_s0 }
  0x34   : > { %p617_p3 = pnand %p616_p0, %p615_p13  ;;  %p621_p9 = scmp.lt.u32.totalorder %s619_s9, %s614_s6 }
  0x35   : > { %p623_p1 = scmp.lt.u32.totalorder %s614_s6, %s847_s4 }
  0x36   : > { %p618_p5 = pneg %p617_p3  ;;  %p622_p2 = por %p621_p9, %p620_p7 }
  0x38   : > { %p624_p4 = por %p623_p1, %p622_p2 }
  0x3a   : > { %p625_p6 = pnand %p624_p4, %p618_p5 }
  0x3c   : > { %628 = shalt.err (!%p625_p6)
}
  0x3d   : > { %s629_s27 = scalar_lea.vmem %s853_s25, 128  ;;  %s719_s28 = smov [#allocation2]  }
  0x3e   : > { %p630_p8 = scmp.ne.s32.totalorder %s853_s25, %s629_s27  ;;  %s634_s29 = sshll.u32 %s719_s28, 4  ;;  %s635_s29 = int_to_ptr.vmem [resolvable:$false] %s634_s29 }
  0x3f   : > { %s636_s23 = scalar_lea.vmem %s635_s29, 256  ;;  %p637_p3 = scmp.lt.s32.totalorder %s853_s25, %s635_s29 }
  0x40   : > { %p632_p10 = pnand %p630_p8, %p616_p0  ;;  %p638_p7 = scmp.lt.s32.totalorder %s636_s23, %s629_s27 }
  0x42   : > { %p633_p13 = pneg %p632_p10  ;;  %p639_p9 = por %p638_p7, %p637_p3 }
  0x44   : > { %p640_p2 = pnand %p639_p9, %p633_p13 }
  0x46   : > { %643 = shalt.err (!%p640_p2)
}
  0x47   : > { %528 = dma.hbm_to_vmem [thread:$0]  (!%p849_p11), %s847_s4, 128, %s853_s25, %s149_s5  }
  0x48   : > { %p967_p5 = scmp.ne.s32.totalorder %s962_s20, 0 }
  0x49   : > { %s883_s30 = sand.u32 (!%p967_p5), 1, %s706_s13   ;;  %p968_p0 = scmp.ne.s32.totalorder (!%p967_p5), %s960_s18, 0 }
  0x4a   : > { %169 = sbr.rel (%p967_p5) target bundleno = 856 (0x358), region = 32  ;;  %s428_s22 = sshll.u32 (!%p967_p5), %s883_s30, 3 }
  0x4b   : > { %s172_s6 = scalar_lea.sflag (!%p967_p5), [#allocation3], %s883_s30  ;;  %s889_s7 = scalar_lea.vmem (!%p967_p5), [#allocation2], %s428_s22 }
  0x51   : > { %689 = dma.done.wait (%p968_p0), %s172_s6, 128  }
  0x52   : > { %691 = vsyncadd (%p968_p0), %s172_s6, 4294967168  ;;  %p969_p11 = scmp.eq.s32.totalorder %s768_s16, 0 }
  0x54   : > { %693 = dma.done.wait (%p969_p11), [#allocation6], 2048   ;;  %p970_p1 = pmov %p969_p11 }
  0x55   : > { %v720_v0 = vmov 0.0|0.0   ;;  %vm721_vm0 = vmmov 0   ;;  %v722_v1 = vmov 0.0   ;;  %v203_v2 = vld [vmem:[#allocation5] sm:$0xff]  ;;  %v204_v3 = vld [vmem:[#allocation5 + $0x8] sm:$0xff]  ;;  %v205_v4 = vld [vmem:[#allocation5 + $0x10] sm:$0xff] }
  0x56   : > { %695 = vsyncadd (%p970_p1), [#allocation6], 4294965248  ;;  %489 = vmatprep.subr.bf16.mxu0 %v720_v0  ;;  %486 = vmatprep.mubr.msk.f32.mxu0 %vm721_vm0, %v722_v1  ;;  %v490_v5 = vpack.c.bf16 %v204_v3, %v203_v2  ;;  %v206_v6 = vld [vmem:[#allocation5 + $0x18] sm:$0xff]  ;;  %v207_v8 = vld [vmem:[#allocation5 + $0x20] sm:$0xff]  ;;  %s723_s4 = smov 127   ;;  %s724_s25 = smov 1  }
  0x57   : > { %v493_v7 = vpack.c.bf16 %v206_v6, %v205_v4  ;;  %v208_v9 = vld [vmem:[#allocation5 + $0x28] sm:$0xff]  ;;  %v209_v11 = vld [vmem:[#allocation5 + $0x30] sm:$0xff]  ;;  %v210_v12 = vld [vmem:[#allocation5 + $0x38] sm:$0xff]  ;;  %v725_v37 = vmov 0   ;;  %s433_s26 = sshll.u32 %s768_s16, 7  ;;  %s201_s5 = scalar_lea.vmem [#allocation7], %s428_s22 }
  0x58   : > { %491 = vmatpush3.bf16.msra.mxu0 %v490_v5  ;;  %v496_v10 = vpack.c.bf16 %v208_v9, %v207_v8  ;;  %v499_v13 = vpack.c.bf16 %v210_v12, %v209_v11  ;;  %v211_v14 = vld [vmem:[#allocation5 + $0x40] sm:$0xff]  ;;  %v212_v15 = vld [vmem:[#allocation5 + $0x48] sm:$0xff]  ;;  %v213_v17 = vld [vmem:[#allocation5 + $0x50] sm:$0xff]  ;;  %578 = vset.pattern.permute.xlu1 %v725_v37  ;;  %s340_s8 = sshll.u32 %s201_s5, 4  ;;  %s909_s11 = scalar_lea.hbm %s956_s3, %s433_s26  ;;  %s911_s8 = int_to_ptr.vmem [resolvable:$true] %s340_s8 }
  0x59   : > { %492 = vmatprep.subr.bf16.mxu0 %v720_v0  ;;  %v502_v16 = vpack.c.bf16 %v212_v15, %v211_v14  ;;  %v214_v18 = vld [vmem:[#allocation5 + $0x58] sm:$0xff]  ;;  %v215_v20 = vld [vmem:[#allocation5 + $0x60] sm:$0xff]  ;;  %v216_v21 = vld [vmem:[#allocation5 + $0x68] sm:$0xff]  ;;  %579 = vset.pattern.permute.xlu0 %v725_v37  ;;  %s327_s27 = scalar_lea.sflag [#allocation4], %s883_s30  ;;  %s644_s28 = scalar_lea.vmem %s911_s8, 128 }
  0x5a   : > { %v505_v19 = vpack.c.bf16 %v214_v18, %v213_v17  ;;  %v508_v22 = vpack.c.bf16 %v216_v21, %v215_v20  ;;  %v217_v23 = vld [vmem:[#allocation5 + $0x70] sm:$0xff]  ;;  %v218_v24 = vld [vmem:[#allocation5 + $0x78] sm:$0xff]  ;;  %p645_p4 = scmp.ne.s32.totalorder %s911_s8, %s644_s28  ;;  %s726_s16 = smov [#allocation7]  }
  0x5b   : > { %v511_v25 = vpack.c.bf16 %v218_v24, %v217_v23  ;;  %v202_v26 = vld [vmem:[%s889_s7] sm:$0xff]  ;;  %s648_s29 = sshll.u32 %s726_s16, 4  ;;  %s649_s29 = int_to_ptr.vmem [resolvable:$false] %s648_s29 }
  0x5c   : > { %494 = vmatpush3.bf16.msra.mxu0 %v493_v7  ;;  %v431_v27 = vld [vmem:[%s955_s2] ss:$0 sm:$0xff]  ;;  %p646_p6 = pnand %p645_p4, %p838_p12  ;;  %s650_s23 = scalar_lea.vmem %s649_s29, 256 }
  0x5d   : > { %495 = vmatprep.subr.bf16.mxu0 %v720_v0  ;;  %p651_p10 = scmp.lt.s32.totalorder %s911_s8, %s649_s29  ;;  %p652_p13 = scmp.lt.s32.totalorder %s650_s23, %s644_s28 }
  0x5e   : > { %p647_p8 = pneg %p646_p6 }
  0x5f   : > { %p653_p3 = por %p652_p13, %p651_p10 }
  0x60   : > { %497 = vmatpush3.bf16.msra.mxu0 %v496_v10 }
  0x61   : > { %498 = vmatprep.subr.bf16.mxu0 %v720_v0  ;;  %p654_p7 = pnand %p653_p3, %p647_p8 }
  0x64   : > { %500 = vmatpush3.bf16.msra.mxu0 %v499_v13 }
  0x65   : > { %501 = vmatprep.subr.bf16.mxu0 %v720_v0 }
  0x68   : > { %503 = vmatpush3.bf16.msra.mxu0 %v502_v16 }
  0x69   : > { %504 = vmatprep.subr.bf16.mxu0 %v720_v0 }
  0x6c   : > { %506 = vmatpush3.bf16.msra.mxu0 %v505_v19 }
  0x6d   : > { %507 = vmatprep.subr.bf16.mxu0 %v720_v0 }
  0x70   : > { %509 = vmatpush3.bf16.msra.mxu0 %v508_v22 }
  0x71   : > { %510 = vmatprep.subr.bf16.mxu0 %v720_v0 }
  0x74   : > { %512 = vmatpush3.bf16.msra.mxu0 %v511_v25 }
  0x77   : > { %487 = vmatmul.mubr.f32.vlgmr.msra.gmra.mrb[0].mxu0 %v202_v26 }
 0x14a   : > { %v292_v28 = vpop.f32.mrb[0].mxu0 }
 0x14b   : > { %v293_v29 = vadd.f32 %v431_v27, %v292_v28  ;;  %v488_v30 = vpop.f32.mrb[1].mxu0 }
 0x14d   : > { %297 = vrot.lane.b32.xlu0 %v293_v29, %s723_s4 }
 0x1bf   : > { %v298_v31 = vpop.permute.xlu0 %297 }
 0x1c0   : > { %v300_v32 = vmax.f32 %v293_v29, %v298_v31 }
 0x1c2   : > { %305 = vrot.lane.b32.xlu0 %v300_v32, %s724_s25  ;;  %v301_v38 = vsub.f32 %v293_v29, %v300_v32 }
 0x1c4   : > { %v302_v39 = vmul.f32 1.442695, %v301_v38 }
 0x234   : > { %v306_v33 = vpop.permute.xlu0 %305 }
 0x235   : > { %v308_v34 = vsub.f32 %v293_v29, %v306_v33 }
 0x237   : > { %v309_v35 = vmul.f32 1.442695, %v308_v34 }
 0x239   : > { %580 = vpow2.f32 %v309_v35 }
 0x23a   : > { %582 = vpow2.f32 %v302_v39 }
 0x243   : > { %v581_v36 = vpop.eup %580 }
 0x244   : > { %312 = vrot.lane.b32.xlu1 %v581_v36, %s723_s4  ;;  %v583_v40 = vpop.eup %582 }
 0x2b6   : > { %v313_v41 = vpop.permute.xlu1 %312 }
 0x2b7   : > { %v315_v42 = vadd.f32 %v583_v40, %v313_v41 }
 0x2b9   : > { %584 = vlog2.f32 %v315_v42 }
 0x2c3   : > { %v585_v43 = vpop.eup %584 }
 0x2c4   : > { %v317_v44 = vmul.f32 0.6931472, %v585_v43 }
 0x2c6   : > { %v318_v45 = vadd.f32 %v317_v44, %v300_v32 }
 0x2c8   : > { %321 = vperm.xlu1 %578, %v318_v45  }
 0x347   : > { %v322_v46 = vpop.permute.xlu1 %321 }
 0x348   : > { %v324_v47 = vsub.f32 %v293_v29, %v322_v46 }
 0x34a   : > { %325 = vst [vmem:[%s201_s5] sm:$0xff] %v324_v47 }
 0x34b   : > { %657 = shalt.err (!%p654_p7)
}
 0x34c   : > { %s658_s30 = scalar_lea.hbm %s909_s11, 128  ;;  %s662_s7 = scalar_lea.hbm %s956_s3, 256 }
 0x34d   : > { %p659_p9 = scmp.ne.s32.totalorder %s909_s11, %s658_s30  ;;  %p663_p0 = scmp.lt.u32.totalorder %s909_s11, %s956_s3 }
 0x34e   : > { %p664_p11 = scmp.lt.u32.totalorder %s662_s7, %s658_s30  ;;  %p666_p4 = scmp.lt.u32.totalorder %s658_s30, %s909_s11 }
 0x34f   : > { %p660_p2 = pnand %p659_p9, %p838_p12 }
 0x350   : > { %p665_p1 = por %p664_p11, %p663_p0 }
 0x351   : > { %p661_p5 = pneg %p660_p2 }
 0x352   : > { %p667_p6 = por %p666_p4, %p665_p1 }
 0x354   : > { %p668_p8 = pnand %p667_p6, %p661_p5 }
 0x356   : > { %671 = shalt.err (!%p668_p8)
}
 0x357   : > { %519 = dma.vmem_to_hbm [thread:$0]  (%p838_p12), %s911_s8, 128, %s909_s11, %s327_s27  }
 0x358 PF: > { %s352_s4 = sand.u32 1, %s702_s12   ;;  %p971_p10 = scmp.ne.s32.totalorder %s961_s19, 0 }
 0x359   : > { %p972_p13 = scmp.ge.s32.totalorder %s714_s15, 2  ;;  %s353_s25 = scalar_lea.sflag [#allocation4], %s352_s4 }
 0x35b   : > { %p530_p3 = pnand %p972_p13, %p971_p10 }
 0x35d   : > { %697 = dma.done.wait (!%p530_p3), %s353_s25, 128  }
 0x35e   : > { %699 = vsyncadd (!%p530_p3), %s353_s25, 4294967168  ;;  %p17_p7 = scmp.ge.s32.totalorder %s803_s24, 4   ;;  %s973_s12 = smov %s706_s13 }
 0x35f   : > { %s974_s13 = smov %s710_s14  ;;  %s975_s14 = smov %s834_s17 }
 0x360   : > { %s976_s15 = smov %s803_s24  ;;  %19 = sbr.rel (!%p17_p7) target bundleno = 6 (0x6), region = 81 }
 0x367   :  { %358 = vsyncpa [#allocation3], 1 }
 0x368   :  { %360 = vsyncpa [#allocation3 + $0x1], 1 }
 0x369   :  { %361 = vsyncpa [#allocation6], 1 }
 0x36a   :  { %362 = vsyncpa [#allocation4], 1 }
 0x36b   :  { %364 = vsyncpa [#allocation4 + $0x1], 1 }

</bundles_post_ra>
